<compile_context>
chip_gen: v7x
topology: tpu7x:2x2x1
jax: 0.10.0
libtpu: 0.0.40
codegen_flags: <defaults>
</compile_context>

<pallas_src>
import functools

import jax
import jax.numpy as jnp
from jax import lax
from jax.experimental import pallas as pl
from jax.experimental.pallas import tpu as pltpu


# ----------------------------- kernels --------------------------------------


def _single_block_kernel(x_ref, w_ref, o_ref):
    # y = x @ W.T with W kept in PyTorch (N, K) layout: contract dim 1 of both.
    # Whole problem is one tile; DMA of W dominates, layout choice is moot here.
    o_ref[...] = lax.dot_general(
        x_ref[...],
        w_ref[...],
        dimension_numbers=(((1,), (1,)), ((), ())),
        preferred_element_type=jnp.float32,
    ).astype(o_ref.dtype)


def _tiled_kernel(x_ref, wt_ref, o_ref, acc_ref):
    # grid = (M//tm, N//tn, K//tk); K (reduction) is the trailing "arbitrary"
    # axis.  Accumulate in an explicit f32 VMEM scratch; write the output tile
    # only once, at the last k step.
    @pl.when(pl.program_id(2) == 0)
    def _():
        acc_ref[...] = jnp.zeros_like(acc_ref)

    acc_ref[...] += jnp.dot(
        x_ref[...], wt_ref[...], preferred_element_type=jnp.float32
    )

    @pl.when(pl.program_id(2) == pl.num_programs(2) - 1)
    def _():
        o_ref[...] = acc_ref[...].astype(o_ref.dtype)


# ----------------------------- wrapper ---------------------------------------


def _fit_tiles(M, N, K, tm, tn, tk, budget_bytes, elem_bytes):
    """Clamp tiles to the problem and shrink until the double-buffered VMEM
    footprint fits the budget.  Keeps tiles multiples of 256 where possible."""
    tm, tn, tk = min(tm, M), min(tn, N), min(tk, K)

    def footprint(tm_, tn_, tk_):
        # double-buffered x + wt + out blocks, plus the f32 scratch accumulator
        return elem_bytes * (2 * tm_ * tk_ + 2 * tn_ * tk_ + 2 * tm_ * tn_) + 4 * tm_ * tn_

    while footprint(tm, tn, tk) > budget_bytes and tk > 256 and K % (tk // 2) == 0:
        tk //= 2
    while footprint(tm, tn, tk) > budget_bytes and tn > 256 and N % (tn // 2) == 0:
        tn //= 2
    # v7x has 2 TensorCores: only the parallel axes (M//tm, N//tn) are sharded
    # across them, so avoid a (1,1,k) grid when the shape allows more blocks.
    while (M // tm) * (N // tn) < 2 and tn > 256 and N % (tn // 2) == 0:
        tn //= 2
    return tm, tn, tk


def single_mm_forward(x, weight, *, tm=512, tn=1024, tk=1024, use_bf16=False):
    """y = x @ weight.T   (nn.Linear with bias=False).

    x:      (M, K)  float32
    weight: (N, K)  float32  (PyTorch Linear convention: out_features x in_features)
    returns (M, N)  float32
    """
    M, K = x.shape
    N, K2 = weight.shape
    assert K == K2, "x / weight contraction dims mismatch"

    flops = 2 * M * N * K
    bytes_accessed = 4 * (M * K + N * K + M * N)
    cost = pl.CostEstimate(
        flops=flops, transcendentals=0, bytes_accessed=bytes_accessed
    )

    # ---- fast path: whole problem fits comfortably in VMEM -> single block ----
    # (covers the module's (1, input_size) GEMV; no grid => no per-step overhead)
    if bytes_accessed <= (4 << 20):
        return pl.pallas_call(
            _single_block_kernel,
            out_shape=jax.ShapeDtypeStruct((M, N), x.dtype),
            in_specs=[
                pl.BlockSpec((M, K), lambda: (0, 0)),  # x, whole array
                pl.BlockSpec((N, K), lambda: (0, 0)),  # weight, whole array
            ],
            out_specs=pl.BlockSpec((M, N), lambda: (0, 0)),
            cost_estimate=cost,
        )(x, weight)

    # ---- general tiled path ----------------------------------------------------
    # Pre-transpose W once in HBM (amortized over M//tm re-reads) so the kernel
    # body is a plain (tm,tk)x(tk,tn) matmul with no per-tile transpose.
    compute_dtype = jnp.bfloat16 if use_bf16 else x.dtype
    x_in = x.astype(compute_dtype)
    wt = jnp.transpose(weight).astype(compute_dtype)  # (K, N)

    elem_bytes = jnp.dtype(compute_dtype).itemsize
    tm, tn, tk = _fit_tiles(M, N, K, tm, tn, tk, budget_bytes=28 << 20,
                            elem_bytes=elem_bytes)
    assert M % tm == 0, f"M={M} must be divisible by tm={tm}"
    assert N % tn == 0, f"N={N} must be divisible by tn={tn}"
    assert K % tk == 0, f"K={K} must be divisible by tk={tk}"

    grid = (M // tm, N // tn, K // tk)
    return pl.pallas_call(
        _tiled_kernel,
        out_shape=jax.ShapeDtypeStruct((M, N), x.dtype),
        grid_spec=pltpu.PrefetchScalarGridSpec(
            num_scalar_prefetch=0,
            grid=grid,
            in_specs=[
                pl.BlockSpec((tm, tk), lambda i, j, k: (i, k)),  # x tile
                pl.BlockSpec((tk, tn), lambda i, j, k: (k, j)),  # W^T tile
            ],
            out_specs=pl.BlockSpec((tm, tn), lambda i, j, k: (i, j)),
            scratch_shapes=[pltpu.VMEM((tm, tn), jnp.float32)],
        ),
        compiler_params=pltpu.CompilerParams(
            dimension_semantics=("parallel", "parallel", "arbitrary"),
            # v5e's default scoped VMEM is 16 MiB; the ~18 MiB double-buffered
            # tile set needs a raised limit (still well under v7x's 64 MiB).
            vmem_limit_bytes=48 << 20,
        ),
        cost_estimate=cost,
    )(x_in, wt)


# ----------------------------- demo / check ---------------------------------


if __name__ == "__main__":
    # Small shape consistent with the module: input_shape = (1, input_size).
    input_size = 256
    key = jax.random.PRNGKey(0)
    kx, kw = jax.random.split(key)

    x = jax.random.normal(kx, (1, input_size), dtype=jnp.float32)
    # Deterministic stand-in for nn.Linear(input_size, input_size, bias=False).weight
    weight = jax.random.normal(kw, (input_size, input_size), dtype=jnp.float32) * 0.02

    y = jax.block_until_ready(single_mm_forward(x, weight))

    # Reference: nn.Linear forward is x @ W.T
    y_ref = x @ weight.T
    assert y.shape == (1, input_size)
    assert jnp.allclose(y, y_ref, atol=1e-4, rtol=1e-4)

    # Also exercise the tiled path (larger, still modest, shapes).
    M2, K2_, N2 = 512, 1024, 2048
    kx2, kw2 = jax.random.split(jax.random.PRNGKey(1))
    x2 = jax.random.normal(kx2, (M2, K2_), dtype=jnp.float32)
    w2 = jax.random.normal(kw2, (N2, K2_), dtype=jnp.float32) * 0.02
    y2 = jax.block_until_ready(single_mm_forward(x2, w2))
    assert jnp.allclose(y2, x2 @ w2.T, atol=1e-3, rtol=1e-3)

    # Optional bf16 input path (f32 accumulation); looser tolerance.
    y3 = jax.block_until_ready(single_mm_forward(x2, w2, use_bf16=True))
    assert jnp.allclose(y3, x2 @ w2.T, atol=5e-2, rtol=5e-2)

    print("KERNEL_OK")
</pallas_src>

<mosaic_0001>
module attributes {stable_mosaic.version = 11 : i64} {
  func.func @_single_block_kernel(%arg0: memref<1x256xf32, #tpu.memory_space<vmem>>, %arg1: memref<256x256xf32, #tpu.memory_space<vmem>>, %arg2: memref<1x256xf32, #tpu.memory_space<vmem>>) attributes {dimension_semantics = [], scalar_prefetch = 0 : i64, scratch_operands = 0 : i64, tpu.core_type = #tpu.core_type<tc>} {
    %c0 = arith.constant 0 : index
    %c0_0 = arith.constant 0 : index
    %0 = vector.load %arg0[%c0, %c0_0] : memref<1x256xf32, #tpu.memory_space<vmem>>, vector<1x256xf32>
    %c0_1 = arith.constant 0 : index
    %c0_2 = arith.constant 0 : index
    %1 = vector.load %arg1[%c0_1, %c0_2] : memref<256x256xf32, #tpu.memory_space<vmem>>, vector<256x256xf32>
    %cst = arith.constant dense<0.000000e+00> : vector<1x256xf32>
    %2 = tpu.matmul %0, %1, %cst {dimension_numbers = #tpu.dot_dimension_numbers<[1], [1], [0], [0], [0, 0, 1, 0], [], []>} : vector<1x256xf32>, vector<256x256xf32>, vector<1x256xf32> -> vector<1x256xf32>
    %c0_3 = arith.constant 0 : index
    %c0_4 = arith.constant 0 : index
    %3 = vector.load %arg2[%c0_3, %c0_4] : memref<1x256xf32, #tpu.memory_space<vmem>>, vector<1x256xf32>
    tpu.vector_store %arg2[%c0_3, %c0_4], %2 {strides = array<i32>} : memref<1x256xf32, #tpu.memory_space<vmem>>, vector<1x256xf32>,
    return
  }
}

</mosaic_0001>

<bundles_post_ra>
// kernel: tpu_custom_call.1
= control target key start
LH: loop header
LB: loop body
LE: loop exit
PB: predicated region body
PF: predicated region fallthrough
CT: control target
= control target key end

     0   :  { %7 = vsyncpa [#allocation3], 0  ;;  %s441_s0 = inlined_call_operand.hbm [shape: f32[1,256], index: 0, kind: input, shape index: {}]   ;;  %s442_s1 = inlined_call_operand.hbm [shape: f32[256,256], index: 1, kind: input, shape index: {}]   ;;  %s443_s2 = inlined_call_operand.hbm [shape: f32[1,256], index: 2, kind: output, shape index: {}]  }
   0x1   :  { %8 = vsyncpa [#allocation6], 0 }
   0x2   :  { %9 = vsyncpa [#allocation4], 0  ;;  %s366_s9 = smov [#allocation2]   ;;  %s367_s11 = smov [#allocation5]  }
   0x3   :  { %s16_s10 = sshll.u32 %s366_s9, 4  ;;  %s25_s12 = sshll.u32 %s367_s11, 4  ;;  %s17_s10 = int_to_ptr.vmem [resolvable:$true] %s16_s10  ;;  %s387_s12 = int_to_ptr.vmem [resolvable:$true] %s25_s12 }
   0x4   :  { %s294_s15 = scalar_lea.hbm %s441_s0, 32 }
   0x5   :  { %p295_p0 = scmp.ne.s32.totalorder %s441_s0, %s294_s15  ;;  %p298_p1 = scmp.lt.u32.totalorder %s294_s15, %s441_s0 }
   0x7   :  { %p300_p2 = pnand %p298_p1, %p295_p0 }
   0x9   :  { %303 = shalt.err (!%p300_p2)
}
   0xa   :  { %s304_s20 = scalar_lea.vmem %s17_s10, 32  ;;  %p309_p4 = scmp.lt.s32.totalorder %s17_s10, %s17_s10 }
   0xb   :  { %p305_p3 = scmp.ne.s32.totalorder %s17_s10, %s304_s20  ;;  %p310_p5 = scmp.lt.s32.totalorder %s304_s20, %s304_s20 }
   0xd   :  { %p311_p6 = por %p310_p5, %p309_p4 }
   0xf   :  { %p312_p7 = pnand %p311_p6, %p305_p3 }
  0x11   :  { %315 = shalt.err (!%p312_p7)
}
  0x12   :  { %19 = dma.hbm_to_vmem [thread:$0]  %s441_s0, 32, %s17_s10, [#allocation3]  }
  0x13   :  { %s316_s25 = scalar_lea.hbm %s442_s1, 8192 }
  0x14   :  { %p317_p8 = scmp.ne.s32.totalorder %s442_s1, %s316_s25  ;;  %p320_p9 = scmp.lt.u32.totalorder %s316_s25, %s442_s1 }
  0x16   :  { %p322_p10 = pnand %p320_p9, %p317_p8 }
  0x18   :  { %325 = shalt.err (!%p322_p10)
}
  0x19   :  { %s326_s30 = scalar_lea.vmem %s387_s12, 8192  ;;  %p331_p12 = scmp.lt.s32.totalorder %s387_s12, %s387_s12 }
  0x1a   :  { %p327_p11 = scmp.ne.s32.totalorder %s387_s12, %s326_s30  ;;  %p332_p13 = scmp.lt.s32.totalorder %s326_s30, %s326_s30 }
  0x1c   :  { %p333_p0 = por %p332_p13, %p331_p12 }
  0x1e   :  { %p334_p1 = pnand %p333_p0, %p327_p11 }
  0x20   :  { %337 = shalt.err (!%p334_p1)
}
  0x21   :  { %s368_s0 = smov 256   ;;  %s369_s3 = smov 16  }
  0x22   :  { %31 = dma.hbm_to_vmem [thread:$0]  %s442_s1, 8192, %s387_s12, [#allocation6], %s368_s0, %s368_s0, %s369_s3  }
  0x23   :  { %360 = dma.done.wait [#allocation3], 32  }
  0x24   :  { %361 = vsyncadd [#allocation3], 4294967264 }
  0x25   :  { %362 = dma.done.wait [#allocation6], 8192  }
  0x26   :  { %363 = vsyncadd [#allocation6], 4294959104  ;;  %v40_v0 = vld [vmem:[#allocation5 + $0x8] sm:$0xff]  ;;  %v42_v1 = vld [vmem:[#allocation5 + $0x18] sm:$0xff]  ;;  %v104_v15 = vlaneseq  ;;  %s371_s1 = smov [#allocation7]  }
  0x27   :  { %v39_v2 = vld [vmem:[#allocation5] sm:$0xff]  ;;  %v224_v3 = vpack.c.bf16 %v42_v1, %v40_v0  ;;  %v41_v4 = vld [vmem:[#allocation5 + $0x10] sm:$0xff]  ;;  %v44_v5 = vld [vmem:[#allocation5 + $0x28] sm:$0xff]  ;;  %s214_s6 = sshll.u32 %s371_s1, 4  ;;  %s215_s6 = int_to_ptr.vmem [resolvable:$true] %s214_s6 }
  0x28   :  { %v46_v6 = vld [vmem:[#allocation5 + $0x38] sm:$0xff]  ;;  %v226_v7 = vpack.c.bf16 %v41_v4, %v39_v2  ;;  %v43_v9 = vld [vmem:[#allocation5 + $0x20] sm:$0xff]  ;;  %v45_v10 = vld [vmem:[#allocation5 + $0x30] sm:$0xff]  ;;  %v419_v20 = vshrl.u32 %v104_v15, 7  ;;  %vm205_vm0 = vcmp.lt.s32.totalorder %v104_v15, 256  ;;  %s338_s7 = scalar_lea.vmem %s215_s6, 32  ;;  %p343_p3 = scmp.lt.s32.totalorder %s215_s6, %s215_s6 }
  0x29   :  { %v228_v8 = vpack.c.bf16 %v46_v6, %v44_v5  ;;  %225 = vmatprep.subr.bf16.mxu0 %v224_v3  ;;  %v48_v11 = vld [vmem:[#allocation5 + $0x48] sm:$0xff]  ;;  %v50_v12 = vld [vmem:[#allocation5 + $0x58] sm:$0xff]  ;;  %v230_v13 = vpack.c.bf16 %v45_v10, %v43_v9  ;;  %v47_v16 = vld [vmem:[#allocation5 + $0x40] sm:$0xff]  ;;  %p339_p2 = scmp.ne.s32.totalorder %s215_s6, %s338_s7  ;;  %p344_p4 = scmp.lt.s32.totalorder %s338_s7, %s338_s7 }
  0x2a   :  { %227 = vmatpush1.bf16.xpose.msra.mxu0 %v226_v7  ;;  %v232_v14 = vpack.c.bf16 %v50_v12, %v48_v11  ;;  %v49_v17 = vld [vmem:[#allocation5 + $0x50] sm:$0xff]  ;;  %v52_v18 = vld [vmem:[#allocation5 + $0x68] sm:$0xff]  ;;  %v54_v19 = vld [vmem:[#allocation5 + $0x78] sm:$0xff]  ;;  %v110_v23 = vsub.s32 1, %v419_v20 }
  0x2b   :  { %229 = vmatprep.subr.bf16.mxu0 %v228_v8  ;;  %v234_v21 = vpack.c.bf16 %v49_v17, %v47_v16  ;;  %v236_v22 = vpack.c.bf16 %v54_v19, %v52_v18  ;;  %v51_v24 = vld [vmem:[#allocation5 + $0x60] sm:$0xff]  ;;  %v53_v25 = vld [vmem:[#allocation5 + $0x70] sm:$0xff]  ;;  %v422_v26 = vld [vmem:[#allocation2] sm:$0x3]  ;;  %p345_p5 = por %p344_p4, %p343_p3 }
  0x2c   :  { %v56_v27 = vld [vmem:[#allocation5 + $0x88] sm:$0xff]  ;;  %v58_v28 = vld [vmem:[#allocation5 + $0x98] sm:$0xff]  ;;  %v111_v29 = vrot.slane %v422_v26, %v110_v23  ;;  %v238_v30 = vpack.c.bf16 %v53_v25, %v51_v24  ;;  %v55_v32 = vld [vmem:[#allocation5 + $0x80] sm:$0xff] }
  0x2d   :  { %v240_v31 = vpack.c.bf16 %v58_v28, %v56_v27  ;;  %v57_v33 = vld [vmem:[#allocation5 + $0x90] sm:$0xff]  ;;  %v60_v34 = vld [vmem:[#allocation5 + $0xa8] sm:$0xff]  ;;  %v62_v35 = vld [vmem:[#allocation5 + $0xb8] sm:$0xff]  ;;  %p346_p6 = pnand %p345_p5, %p339_p2 }
  0x2e   :  { %178 = vmatprep.mubr.f32.mxu0 %v111_v29  ;;  %v242_v36 = vpack.c.bf16 %v57_v33, %v55_v32  ;;  %v244_v37 = vpack.c.bf16 %v62_v35, %v60_v34  ;;  %v59_v38 = vld [vmem:[#allocation5 + $0xa0] sm:$0xff]  ;;  %v61_v39 = vld [vmem:[#allocation5 + $0xb0] sm:$0xff]  ;;  %v64_v40 = vld [vmem:[#allocation5 + $0xc8] sm:$0xff] }
  0x2f   :  { %v66_v41 = vld [vmem:[#allocation5 + $0xd8] sm:$0xff]  ;;  %v246_v42 = vpack.c.bf16 %v61_v39, %v59_v38  ;;  %v63_v44 = vld [vmem:[#allocation5 + $0xc0] sm:$0xff]  ;;  %v65_v45 = vld [vmem:[#allocation5 + $0xd0] sm:$0xff] }
  0x30   :  { %v248_v43 = vpack.c.bf16 %v66_v41, %v64_v40  ;;  %v68_v46 = vld [vmem:[#allocation5 + $0xe8] sm:$0xff]  ;;  %v70_v47 = vld [vmem:[#allocation5 + $0xf8] sm:$0xff]  ;;  %v250_v48 = vpack.c.bf16 %v65_v45, %v63_v44  ;;  %v67_v50 = vld [vmem:[#allocation5 + $0xe0] sm:$0xff]  ;;  %v106_v40 = vsub.s32 0, %v419_v20 }
  0x31   :  { %v252_v49 = vpack.c.bf16 %v70_v47, %v68_v46  ;;  %v69_v51 = vld [vmem:[#allocation5 + $0xf0] sm:$0xff]  ;;  %v72_v52 = vld [vmem:[#allocation5 + $0x108] sm:$0xff]  ;;  %v74_v53 = vld [vmem:[#allocation5 + $0x118] sm:$0xff] }
  0x32   :  { %231 = vmatpush1.bf16.xpose.msra.mxu0 %v230_v13  ;;  %v254_v54 = vpack.c.bf16 %v69_v51, %v67_v50  ;;  %v256_v55 = vpack.c.bf16 %v74_v53, %v72_v52  ;;  %v71_v56 = vld [vmem:[#allocation5 + $0x100] sm:$0xff]  ;;  %v73_v57 = vld [vmem:[#allocation5 + $0x110] sm:$0xff]  ;;  %v76_v58 = vld [vmem:[#allocation5 + $0x128] sm:$0xff]  ;;  %v107_v41 = vrot.slane %v422_v26, %v106_v40 }
  0x33   :  { %233 = vmatprep.subr.bf16.mxu0 %v232_v14  ;;  %v78_v59 = vld [vmem:[#allocation5 + $0x138] sm:$0xff]  ;;  %v258_v60 = vpack.c.bf16 %v73_v57, %v71_v56  ;;  %v75_v62 = vld [vmem:[#allocation5 + $0x120] sm:$0xff]  ;;  %v77_v63 = vld [vmem:[#allocation5 + $0x130] sm:$0xff] }
  0x34   :  { %v260_v61 = vpack.c.bf16 %v78_v59, %v76_v58  ;;  %v80_v0 = vld [vmem:[#allocation5 + $0x148] sm:$0xff]  ;;  %v82_v1 = vld [vmem:[#allocation5 + $0x158] sm:$0xff]  ;;  %v262_v2 = vpack.c.bf16 %v77_v63, %v75_v62  ;;  %v79_v4 = vld [vmem:[#allocation5 + $0x140] sm:$0xff] }
  0x35   :  { %v264_v3 = vpack.c.bf16 %v82_v1, %v80_v0  ;;  %v81_v5 = vld [vmem:[#allocation5 + $0x150] sm:$0xff]  ;;  %v84_v6 = vld [vmem:[#allocation5 + $0x168] sm:$0xff]  ;;  %v86_v7 = vld [vmem:[#allocation5 + $0x178] sm:$0xff] }
  0x36   :  { %v266_v8 = vpack.c.bf16 %v81_v5, %v79_v4  ;;  %v268_v9 = vpack.c.bf16 %v86_v7, %v84_v6  ;;  %v83_v10 = vld [vmem:[#allocation5 + $0x160] sm:$0xff]  ;;  %v85_v11 = vld [vmem:[#allocation5 + $0x170] sm:$0xff]  ;;  %v88_v12 = vld [vmem:[#allocation5 + $0x188] sm:$0xff] }
  0x37   :  { %v90_v13 = vld [vmem:[#allocation5 + $0x198] sm:$0xff]  ;;  %v270_v14 = vpack.c.bf16 %v85_v11, %v83_v10  ;;  %v87_v17 = vld [vmem:[#allocation5 + $0x180] sm:$0xff]  ;;  %v89_v18 = vld [vmem:[#allocation5 + $0x190] sm:$0xff] }
  0x38   :  { %v272_v16 = vpack.c.bf16 %v90_v13, %v88_v12  ;;  %v92_v19 = vld [vmem:[#allocation5 + $0x1a8] sm:$0xff]  ;;  %v91_v24 = vld [vmem:[#allocation5 + $0x1a0] sm:$0xff]  ;;  %v93_v25 = vld [vmem:[#allocation5 + $0x1b0] sm:$0xff] }
  0x39   :  { %v96_v27 = vld [vmem:[#allocation5 + $0x1c8] sm:$0xff]  ;;  %v98_v28 = vld [vmem:[#allocation5 + $0x1d8] sm:$0xff]  ;;  %v278_v29 = vpack.c.bf16 %v93_v25, %v91_v24  ;;  %v97_v32 = vld [vmem:[#allocation5 + $0x1d0] sm:$0xff] }
  0x3a   :  { %235 = vmatpush1.bf16.xpose.msra.mxu0 %v234_v21  ;;  %v94_v21 = vld [vmem:[#allocation5 + $0x1b8] sm:$0xff]  ;;  %v100_v33 = vld [vmem:[#allocation5 + $0x1e8] sm:$0xff]  ;;  %v101_v38 = vld [vmem:[#allocation5 + $0x1f0] sm:$0xff] }
  0x3b   :  { %237 = vmatprep.subr.bf16.mxu0 %v236_v22  ;;  %v274_v22 = vpack.c.bf16 %v89_v18, %v87_v17  ;;  %v276_v23 = vpack.c.bf16 %v94_v21, %v92_v19  ;;  %v102_v34 = vld [vmem:[#allocation5 + $0x1f8] sm:$0xff] }
  0x42   :  { %239 = vmatpush1.bf16.xpose.msra.mxu0 %v238_v30  ;;  %v280_v30 = vpack.c.bf16 %v98_v28, %v96_v27 }
  0x43   :  { %241 = vmatprep.subr.bf16.mxu0 %v240_v31  ;;  %v95_v31 = vld [vmem:[#allocation5 + $0x1c0] sm:$0xff] }
  0x44   :  { %v282_v35 = vpack.c.bf16 %v97_v32, %v95_v31 }
  0x4a   :  { %243 = vmatpush1.bf16.xpose.msra.mxu0 %v242_v36  ;;  %v284_v36 = vpack.c.bf16 %v102_v34, %v100_v33 }
  0x4b   :  { %245 = vmatprep.subr.bf16.mxu0 %v244_v37  ;;  %v99_v37 = vld [vmem:[#allocation5 + $0x1e0] sm:$0xff] }
  0x4c   :  { %v286_v39 = vpack.c.bf16 %v101_v38, %v99_v37 }
  0x52   :  { %247 = vmatpush1.bf16.xpose.msra.mxu0 %v246_v42  ;;  %v370_v42 = vmov 1966171168  }
  0x53   :  { %249 = vmatprep.subr.bf16.mxu0 %v248_v43  ;;  %v189_v43 = vunpack.c.l.s4 %v370_v42 }
  0x55   :  { %v190_v44 = vunpack.c.0.s8 %v189_v43 }
  0x57   :  { %v193_v46 = vsub.s32 %v190_v44, %v419_v20 }
  0x5a   :  { %251 = vmatpush1.bf16.xpose.msra.mxu0 %v250_v48 }
  0x5b   :  { %253 = vmatprep.subr.bf16.mxu0 %v252_v49 }
  0x62   :  { %255 = vmatpush1.bf16.xpose.msra.mxu0 %v254_v54 }
  0x63   :  { %257 = vmatprep.subr.bf16.mxu0 %v256_v55 }
  0x6a   :  { %259 = vmatpush1.bf16.xpose.msra.mxu0 %v258_v60 }
  0x6b   :  { %261 = vmatprep.subr.bf16.mxu0 %v260_v61 }
  0x72   :  { %263 = vmatpush1.bf16.xpose.msra.mxu0 %v262_v2 }
  0x73   :  { %265 = vmatprep.subr.bf16.mxu0 %v264_v3 }
  0x7a   :  { %267 = vmatpush1.bf16.xpose.msra.mxu0 %v266_v8 }
  0x7b   :  { %269 = vmatprep.subr.bf16.mxu0 %v268_v9 }
  0x82   :  { %271 = vmatpush1.bf16.xpose.msra.mxu0 %v270_v14 }
  0x83   :  { %273 = vmatprep.subr.bf16.mxu0 %v272_v16 }
  0x8a   :  { %275 = vmatpush1.bf16.xpose.msra.mxu0 %v274_v22 }
  0x8b   :  { %277 = vmatprep.subr.bf16.mxu0 %v276_v23 }
  0x92   :  { %279 = vmatpush1.bf16.xpose.msra.mxu0 %v278_v29 }
  0x93   :  { %281 = vmatprep.subr.bf16.mxu0 %v280_v30 }
  0x9a   :  { %283 = vmatpush1.bf16.xpose.msra.mxu0 %v282_v35 }
  0x9b   :  { %285 = vmatprep.subr.bf16.mxu0 %v284_v36 }
  0xa2   :  { %287 = vmatpush1.bf16.xpose.msra.mxu0 %v286_v39 }
  0xa9   :  { %179 = vmatmul.mubr.f32.vlgmr.msra.gmra.mrb[0].mxu0 %v107_v41 }
 0x17c   :  { %v180_v45 = vpop.f32.mrb[0].mxu0 }
 0x17d   :  { %v182_v47 = vpop.f32.mrb[1].mxu0 }
 0x17e   :  { %v187_v48 = vcombine.low %v180_v45, %v182_v47 }
 0x180   :  { %v194_v49 = vrot.slane %v187_v48, %v193_v46 }
 0x182   :  { %v201_v50 = vrot.slane %v194_v49, %v193_v46 }
 0x184   :  { %207 = vst.msk [vmem:[#allocation7] sm:$0x3] %vm205_vm0, %v201_v50 }
 0x185   :  { %349 = shalt.err (!%p346_p6)
}
 0x186   :  { %s350_s10 = scalar_lea.hbm %s443_s2, 32 }
 0x187   :  { %p351_p7 = scmp.ne.s32.totalorder %s443_s2, %s350_s10  ;;  %p354_p8 = scmp.lt.u32.totalorder %s350_s10, %s443_s2 }
 0x189   :  { %p356_p9 = pnand %p354_p8, %p351_p7 }
 0x18b   :  { %359 = shalt.err (!%p356_p9)
}
 0x18c   :  { %217 = dma.vmem_to_hbm [thread:$0]  %s215_s6, 32, %s443_s2, [#allocation4]  }
 0x18d   :  { %364 = dma.done.wait [#allocation4], 32  }
 0x18e   :  { %365 = vsyncadd [#allocation4], 4294967264 }
 0x18f   :  { %221 = vsyncpa [#allocation3], 1 }
 0x190   :  { %222 = vsyncpa [#allocation6], 1 }
 0x191   :  { %223 = vsyncpa [#allocation4], 1 }

</bundles_post_ra>
